<compile_context>
chip_gen: v5e
topology: v5e:2x2
jax: 0.10.0
libtpu: 0.0.40
codegen_flags: <defaults>
</compile_context>

<pallas_src>
import functools

import jax
import jax.numpy as jnp
from jax import lax
from jax.experimental import pallas as pl
from jax.experimental.pallas import tpu as pltpu

HIDDEN = 256    # fc1/fc2 width (fixed by the module)
SUBLANE = 8     # fc3 output rows after zero-padding 1 -> 8 sublanes


def _round_up(x, m):
    return (x + m - 1) // m * m


def _default_bf16_epilogue():
    """bf16 bias+ReLU epilogue only on generations with bf16 VALUs."""
    try:
        kind = jax.devices()[0].device_kind.lower()
    except Exception:
        return False
    return ("v6" in kind) or ("v7" in kind)


def qnet_kernel(obs_ref, act_ref, w1o_ref, w1a_ref, w2_ref, w3t_ref, bias_ref,
                o_ref, *, bf16_epilogue):
    """One batch tile of the TD3 critic forward pass.

    obs_ref : [TB, obs_dim]   f32
    act_ref : [TB, act_dim]   f32
    w1o_ref : [obs_dim, 256]  bf16  (fc1 rows that multiply obs features)
    w1a_ref : [act_dim, 256]  bf16  (fc1 rows that multiply act features)
    w2_ref  : [256, 256]      bf16
    w3t_ref : [8, 256]        bf16  (fc3 weight transposed, padded 1 -> 8 rows)
    bias_ref: [3, 256]        f32   (row0=b1, row1=b2, row2[0]=b3)
    o_ref   : [8, TB]         f32   (q for the tile in row 0, batch in lanes)
    """
    obs = obs_ref[...].astype(jnp.bfloat16)
    act = act_ref[...].astype(jnp.bfloat16)

    # fc1 split over [obs | act]: two MXU pushes accumulating into the same
    # f32 result replaces a JAX-side concatenate.
    h1 = jnp.dot(obs, w1o_ref[...], preferred_element_type=jnp.float32)
    h1 = h1 + jnp.dot(act, w1a_ref[...], preferred_element_type=jnp.float32)

    if bf16_epilogue:
        # v6e / v7x: bf16 VALUs -> bias + ReLU + hand-off all in bf16.
        b1 = bias_ref[0:1, :].astype(jnp.bfloat16)
        b2 = bias_ref[1:2, :].astype(jnp.bfloat16)
        h1 = jnp.maximum(h1.astype(jnp.bfloat16) + b1, 0.0)
        h2 = jnp.dot(h1, w2_ref[...], preferred_element_type=jnp.float32)
        h2 = jnp.maximum(h2.astype(jnp.bfloat16) + b2, 0.0)
    else:
        # v5e path: f32 epilogue (no bf16 VALU), cast only for the next matmul.
        b1 = bias_ref[0:1, :]
        b2 = bias_ref[1:2, :]
        h1 = jnp.maximum(h1 + b1, 0.0).astype(jnp.bfloat16)
        h2 = jnp.dot(h1, w2_ref[...], preferred_element_type=jnp.float32)
        h2 = jnp.maximum(h2 + b2, 0.0).astype(jnp.bfloat16)

    # fc3 in batch-in-lanes layout: [8, 256] x [TB, 256] contracted on K=256
    # -> [8, TB].  Only row 0 of w3t is non-zero, so rows 1..7 are zero.
    q_t = lax.dot_general(w3t_ref[...], h2, (((1,), (1,)), ((), ())),
                          preferred_element_type=jnp.float32)
    b3 = bias_ref[2:3, 0:1]                      # [1, 1] scalar bias
    o_ref[...] = (q_t + b3).astype(o_ref.dtype)


def qnetwork_forward(obs, act, params, *, batch_tile=None, bf16_epilogue=None):
    """obs: [B, obs_dim] f32, act: [B, act_dim] f32 -> q: [B, 1] f32."""
    w1o, w1a, w2b, w3t, bias = params
    B, obs_dim = obs.shape
    act_dim = act.shape[1]

    if bf16_epilogue is None:
        bf16_epilogue = _default_bf16_epilogue()

    # Batch tile: the output puts batch in lanes, so a multi-step tile must be
    # a multiple of 128; a single-step tile may equal B exactly.
    if batch_tile is None:
        if B <= 128:
            tb = B                                       # one tile
        else:
            # >= 2 grid steps (feeds both v7x TCs), lane-aligned, capped so
            # per-step work stays large but VMEM stays tiny (<~8 MiB).
            tb = min(2048, _round_up(pl.cdiv(B, 2), 128))
    else:
        tb = batch_tile
        if tb >= B:
            tb = B
        elif tb % 128 != 0:
            tb = _round_up(tb, 128)

    grid = (pl.cdiv(B, tb),)

    out = pl.pallas_call(
        functools.partial(qnet_kernel, bf16_epilogue=bf16_epilogue),
        out_shape=jax.ShapeDtypeStruct((SUBLANE, B), jnp.float32),
        grid=grid,
        in_specs=[
            pl.BlockSpec((tb, obs_dim), lambda i: (i, 0)),        # obs tile
            pl.BlockSpec((tb, act_dim), lambda i: (i, 0)),        # act tile
            pl.BlockSpec((obs_dim, HIDDEN), lambda i: (0, 0)),    # w1 (obs part)
            pl.BlockSpec((act_dim, HIDDEN), lambda i: (0, 0)),    # w1 (act part)
            pl.BlockSpec((HIDDEN, HIDDEN), lambda i: (0, 0)),     # w2
            pl.BlockSpec((SUBLANE, HIDDEN), lambda i: (0, 0)),    # w3 transposed
            pl.BlockSpec((3, HIDDEN), lambda i: (0, 0)),          # fused biases
        ],
        out_specs=pl.BlockSpec((SUBLANE, tb), lambda i: (0, i)),  # batch in lanes
        compiler_params=pltpu.CompilerParams(
            dimension_semantics=("parallel",)),   # shard batch over TCs (v7x)
    )(obs, act, w1o, w1a, w2b, w3t, bias)

    # Row 0 holds q; contiguous read of B f32 values.
    return out[0, :, None]


def init_linear(key, in_features, out_features):
    """PyTorch nn.Linear default init (uniform +-1/sqrt(in)).
    Returns weight transposed to [in, out] (f32) and bias [out] (f32)."""
    kw, kb = jax.random.split(key)
    bound = 1.0 / jnp.sqrt(jnp.float32(in_features))
    w_t = jax.random.uniform(kw, (in_features, out_features), jnp.float32,
                             -bound, bound)
    b = jax.random.uniform(kb, (out_features,), jnp.float32, -bound, bound)
    return w_t, b


def prepare_params(obs_dim, w1, b1, w2, b2, w3, b3):
    """Repack f32 [in, out] weights into the kernel layout: bf16 weights,
    fc1 split over obs/act rows, fc3 transposed + zero-padded to 8 rows,
    biases fused into a single [3, 256] f32 array."""
    w1o = w1[:obs_dim].astype(jnp.bfloat16)
    w1a = w1[obs_dim:].astype(jnp.bfloat16)
    w2b = w2.astype(jnp.bfloat16)
    w3t = jnp.zeros((SUBLANE, HIDDEN), jnp.bfloat16)
    w3t = w3t.at[: w3.shape[1], :].set(w3.T.astype(jnp.bfloat16))
    bias = jnp.zeros((3, HIDDEN), jnp.float32)
    bias = bias.at[0].set(b1).at[1].set(b2).at[2, : b3.shape[0]].set(b3)
    return w1o, w1a, w2b, w3t, bias


def _reference_matched(obs, act, w1, b1, w2, b2, w3, b3, *, bf16_epilogue):
    """Mirrors the kernel's bf16-weight / f32-accumulate math."""
    x = jnp.concatenate([obs, act], axis=-1).astype(jnp.bfloat16)
    w1b, w2b, w3b = (w.astype(jnp.bfloat16) for w in (w1, w2, w3))
    h1 = jnp.dot(x, w1b, preferred_element_type=jnp.float32)
    if bf16_epilogue:
        h1 = jnp.maximum(h1.astype(jnp.bfloat16) + b1.astype(jnp.bfloat16), 0.0)
        h2 = jnp.dot(h1, w2b, preferred_element_type=jnp.float32)
        h2 = jnp.maximum(h2.astype(jnp.bfloat16) + b2.astype(jnp.bfloat16), 0.0)
    else:
        h1 = jnp.maximum(h1 + b1, 0.0).astype(jnp.bfloat16)
        h2 = jnp.dot(h1, w2b, preferred_element_type=jnp.float32)
        h2 = jnp.maximum(h2 + b2, 0.0).astype(jnp.bfloat16)
    return jnp.dot(h2, w3b, preferred_element_type=jnp.float32) + b3


def _reference_f32(obs, act, w1, b1, w2, b2, w3, b3):
    """Straight f32 PyTorch-equivalent forward."""
    x = jnp.concatenate([obs, act], axis=-1)
    h1 = jnp.maximum(x @ w1 + b1, 0.0)
    h2 = jnp.maximum(h1 @ w2 + b2, 0.0)
    return h2 @ w3 + b3


if __name__ == "__main__":
    key = jax.random.PRNGKey(0)
    k_obs, k_act, k1, k2, k3 = jax.random.split(key, 5)

    batch = 8
    obs_dim = 16
    act_dim = 8
    in_dim = obs_dim + act_dim

    obs = jax.random.normal(k_obs, (batch, obs_dim), jnp.float32)
    act = jax.random.normal(k_act, (batch, act_dim), jnp.float32)

    w1, b1 = init_linear(k1, in_dim, HIDDEN)
    w2, b2 = init_linear(k2, HIDDEN, HIDDEN)
    w3, b3 = init_linear(k3, HIDDEN, 1)

    params = prepare_params(obs_dim, w1, b1, w2, b2, w3, b3)
    bf16_epi = _default_bf16_epilogue()

    q = qnetwork_forward(obs, act, params, bf16_epilogue=bf16_epi)
    q = jax.block_until_ready(q)
    assert q.shape == (batch, 1)

    # Tight check against a reference that mirrors the kernel's numerics.
    q_ref = _reference_matched(obs, act, w1, b1, w2, b2, w3, b3,
                               bf16_epilogue=bf16_epi)
    diff_matched = jnp.max(jnp.abs(q - q_ref))
    assert jnp.allclose(q, q_ref, atol=5e-3, rtol=5e-3), \
        f"matched-ref max diff {diff_matched}"

    # Loose check against the true f32 PyTorch forward (bf16 weight storage
    # introduces ~1e-2-scale error on q; documented and bounded here).
    q_f32 = _reference_f32(obs, act, w1, b1, w2, b2, w3, b3)
    diff_f32 = jnp.max(jnp.abs(q - q_f32))
    assert jnp.allclose(q, q_f32, atol=5e-2, rtol=5e-2), \
        f"f32-ref max diff {diff_f32}"

    print("KERNEL_OK")
</pallas_src>

<mosaic_0001>
module attributes {stable_mosaic.version = 11 : i64} {
  func.func @qnet_kernel(%arg0: i32, %arg1: memref<8x16xf32, #tpu.memory_space<vmem>>, %arg2: memref<8x8xf32, #tpu.memory_space<vmem>>, %arg3: memref<16x256xbf16, #tpu.memory_space<vmem>>, %arg4: memref<8x256xbf16, #tpu.memory_space<vmem>>, %arg5: memref<256x256xbf16, #tpu.memory_space<vmem>>, %arg6: memref<8x256xbf16, #tpu.memory_space<vmem>>, %arg7: memref<3x256xf32, #tpu.memory_space<vmem>>, %arg8: memref<8x8xf32, #tpu.memory_space<vmem>>) attributes {dimension_semantics = [#tpu.dimension_semantics<parallel>], iteration_bounds = array<i64: 1>, scalar_prefetch = 0 : i64, scratch_operands = 0 : i64, tpu.core_type = #tpu.core_type<tc>, window_params = [{transform_indices = @transform_0, window_bounds = array<i64: 8, 16>}, {transform_indices = @transform_1, window_bounds = array<i64: 8, 8>}, {pipeline_mode = #tpu.pipeline_mode<synchronous>, transform_indices = @transform_2, window_bounds = array<i64: 16, 256>}, {pipeline_mode = #tpu.pipeline_mode<synchronous>, transform_indices = @transform_3, window_bounds = array<i64: 8, 256>}, {pipeline_mode = #tpu.pipeline_mode<synchronous>, transform_indices = @transform_4, window_bounds = array<i64: 256, 256>}, {pipeline_mode = #tpu.pipeline_mode<synchronous>, transform_indices = @transform_5, window_bounds = array<i64: 8, 256>}, {pipeline_mode = #tpu.pipeline_mode<synchronous>, transform_indices = @transform_6, window_bounds = array<i64: 3, 256>}, {transform_indices = @transform_7, window_bounds = array<i64: 8, 8>}]} {
    %c0 = arith.constant 0 : index
    %c0_0 = arith.constant 0 : index
    %0 = vector.load %arg1[%c0, %c0_0] : memref<8x16xf32, #tpu.memory_space<vmem>>, vector<8x16xf32>
    %1 = arith.truncf %0 : vector<8x16xf32> to vector<8x16xbf16>
    %c0_1 = arith.constant 0 : index
    %c0_2 = arith.constant 0 : index
    %2 = vector.load %arg2[%c0_1, %c0_2] : memref<8x8xf32, #tpu.memory_space<vmem>>, vector<8x8xf32>
    %3 = arith.truncf %2 : vector<8x8xf32> to vector<8x8xbf16>
    %c0_3 = arith.constant 0 : index
    %c0_4 = arith.constant 0 : index
    %4 = vector.load %arg3[%c0_3, %c0_4] : memref<16x256xbf16, #tpu.memory_space<vmem>>, vector<16x256xbf16>
    %cst = arith.constant dense<0.000000e+00> : vector<8x256xf32>
    %5 = tpu.matmul %1, %4, %cst {dimension_numbers = #tpu.dot_dimension_numbers<[1], [0], [0], [1], [0, 0, 1, 1], [], []>} : vector<8x16xbf16>, vector<16x256xbf16>, vector<8x256xf32> -> vector<8x256xf32>
    %c0_5 = arith.constant 0 : index
    %c0_6 = arith.constant 0 : index
    %6 = vector.load %arg4[%c0_5, %c0_6] : memref<8x256xbf16, #tpu.memory_space<vmem>>, vector<8x256xbf16>
    %cst_7 = arith.constant dense<0.000000e+00> : vector<8x256xf32>
    %7 = tpu.matmul %3, %6, %cst_7 {dimension_numbers = #tpu.dot_dimension_numbers<[1], [0], [0], [1], [0, 0, 1, 1], [], []>} : vector<8x8xbf16>, vector<8x256xbf16>, vector<8x256xf32> -> vector<8x256xf32>
    %8 = arith.addf %5, %7 : vector<8x256xf32>
    %c0_8 = arith.constant 0 : index
    %c0_9 = arith.constant 0 : index
    %9 = vector.load %arg7[%c0_8, %c0_9] : memref<3x256xf32, #tpu.memory_space<vmem>>, vector<1x256xf32>
    %c1 = arith.constant 1 : index
    %c0_10 = arith.constant 0 : index
    %10 = vector.load %arg7[%c1, %c0_10] : memref<3x256xf32, #tpu.memory_space<vmem>>, vector<1x256xf32>
    %11 = vector.broadcast %9 : vector<1x256xf32> to vector<8x256xf32>
    %12 = arith.addf %8, %11 : vector<8x256xf32>
    %cst_11 = arith.constant 0.000000e+00 : f32
    %13 = vector.broadcast %cst_11 : f32 to vector<8x256xf32>
    %14 = arith.maximumf %12, %13 : vector<8x256xf32>
    %15 = arith.truncf %14 : vector<8x256xf32> to vector<8x256xbf16>
    %c0_12 = arith.constant 0 : index
    %c0_13 = arith.constant 0 : index
    %16 = vector.load %arg5[%c0_12, %c0_13] : memref<256x256xbf16, #tpu.memory_space<vmem>>, vector<256x256xbf16>
    %cst_14 = arith.constant dense<0.000000e+00> : vector<8x256xf32>
    %17 = tpu.matmul %15, %16, %cst_14 {dimension_numbers = #tpu.dot_dimension_numbers<[1], [0], [0], [1], [0, 0, 1, 1], [], []>} : vector<8x256xbf16>, vector<256x256xbf16>, vector<8x256xf32> -> vector<8x256xf32>
    %18 = vector.broadcast %10 : vector<1x256xf32> to vector<8x256xf32>
    %19 = arith.addf %17, %18 : vector<8x256xf32>
    %cst_15 = arith.constant 0.000000e+00 : f32
    %20 = vector.broadcast %cst_15 : f32 to vector<8x256xf32>
    %21 = arith.maximumf %19, %20 : vector<8x256xf32>
    %22 = arith.truncf %21 : vector<8x256xf32> to vector<8x256xbf16>
    %c0_16 = arith.constant 0 : index
    %c0_17 = arith.constant 0 : index
    %23 = vector.load %arg6[%c0_16, %c0_17] : memref<8x256xbf16, #tpu.memory_space<vmem>>, vector<8x256xbf16>
    %cst_18 = arith.constant dense<0.000000e+00> : vector<8x8xf32>
    %24 = tpu.matmul %23, %22, %cst_18 {dimension_numbers = #tpu.dot_dimension_numbers<[1], [1], [0], [0], [0, 0, 1, 0], [], []>} : vector<8x256xbf16>, vector<8x256xbf16>, vector<8x8xf32> -> vector<8x8xf32>
    %c2 = arith.constant 2 : index
    %c0_19 = arith.constant 0 : index
    %25 = vector.load %arg7[%c2, %c0_19] : memref<3x256xf32, #tpu.memory_space<vmem>>, vector<1x1xf32>
    %26 = vector.broadcast %25 : vector<1x1xf32> to vector<8x8xf32>
    %27 = arith.addf %24, %26 : vector<8x8xf32>
    %c0_20 = arith.constant 0 : index
    %c0_21 = arith.constant 0 : index
    %28 = vector.load %arg8[%c0_20, %c0_21] : memref<8x8xf32, #tpu.memory_space<vmem>>, vector<8x8xf32>
    tpu.vector_store %arg8[%c0_20, %c0_21], %27 {strides = array<i32>} : memref<8x8xf32, #tpu.memory_space<vmem>>, vector<8x8xf32>,
    return
  }
  func.func @transform_0(%arg0: i32) -> (i32, i32) {
    %c0_i32 = arith.constant 0 : i32
    %c0_i32_0 = arith.constant 0 : i32
    return %arg0, %c0_i32 : i32, i32
  }
  func.func @transform_1(%arg0: i32) -> (i32, i32) {
    %c0_i32 = arith.constant 0 : i32
    %c0_i32_0 = arith.constant 0 : i32
    return %arg0, %c0_i32 : i32, i32
  }
  func.func @transform_2(%arg0: i32) -> (i32, i32) {
    %c0_i32 = arith.constant 0 : i32
    %c0_i32_0 = arith.constant 0 : i32
    %c0_i32_1 = arith.constant 0 : i32
    return %c0_i32, %c0_i32_0 : i32, i32
  }
  func.func @transform_3(%arg0: i32) -> (i32, i32) {
    %c0_i32 = arith.constant 0 : i32
    %c0_i32_0 = arith.constant 0 : i32
    %c0_i32_1 = arith.constant 0 : i32
    return %c0_i32, %c0_i32_0 : i32, i32
  }
  func.func @transform_4(%arg0: i32) -> (i32, i32) {
    %c0_i32 = arith.constant 0 : i32
    %c0_i32_0 = arith.constant 0 : i32
    %c0_i32_1 = arith.constant 0 : i32
    return %c0_i32, %c0_i32_0 : i32, i32
  }
  func.func @transform_5(%arg0: i32) -> (i32, i32) {
    %c0_i32 = arith.constant 0 : i32
    %c0_i32_0 = arith.constant 0 : i32
    %c0_i32_1 = arith.constant 0 : i32
    return %c0_i32, %c0_i32_0 : i32, i32
  }
  func.func @transform_6(%arg0: i32) -> (i32, i32) {
    %c0_i32 = arith.constant 0 : i32
    %c0_i32_0 = arith.constant 0 : i32
    %c0_i32_1 = arith.constant 0 : i32
    return %c0_i32, %c0_i32_0 : i32, i32
  }
  func.func @transform_7(%arg0: i32) -> (i32, i32) {
    %c0_i32 = arith.constant 0 : i32
    %c0_i32_0 = arith.constant 0 : i32
    return %c0_i32, %arg0 : i32, i32
  }
}

</mosaic_0001>

<bundles_post_ra>
// kernel: tpu_custom_call.1
= control target key start
LH: loop header
LB: loop body
LE: loop exit
PB: predicated region body
PF: predicated region fallthrough
CT: control target
= control target key end

     0   :  { %12 = vsyncpa [#allocation3], 0  ;;  %s1012_s0 = inlined_call_operand.hbm [shape: f32[8,16], index: 0, kind: input, shape index: {}]   ;;  %s1013_s1 = inlined_call_operand.hbm [shape: f32[8,8], index: 1, kind: input, shape index: {}]   ;;  %s1014_s2 = inlined_call_operand.hbm [shape: bf16[16,256], index: 2, kind: input, shape index: {}]   ;;  %s1015_s3 = inlined_call_operand.hbm [shape: bf16[8,256], index: 3, kind: input, shape index: {}]   ;;  %s1016_s4 = inlined_call_operand.hbm [shape: bf16[256,256], index: 4, kind: input, shape index: {}]   ;;  %s1017_s5 = inlined_call_operand.hbm [shape: bf16[8,256], index: 5, kind: input, shape index: {}]   ;;  %s1018_s6 = inlined_call_operand.hbm [shape: f32[3,256], index: 6, kind: input, shape index: {}]   ;;  %s1019_s7 = inlined_call_operand.hbm [shape: f32[8,8], index: 7, kind: output, shape index: {}]  }
   0x1   :  { %13 = vsyncpa [#allocation6], 0 }
   0x2   :  { %14 = vsyncpa [#allocation9], 0 }
   0x3   :  { %15 = vsyncpa [#allocation12], 0  ;;  %s33_s26 = sshll.u32 %s1013_s1, 4  ;;  %s34_s26 = int_to_ptr.hbm [resolvable:$true] %s33_s26 }
   0x4   :  { %16 = vsyncpa [#allocation4], 0  ;;  %s931_s27 = smov [#allocation5]   ;;  %s57_s8 = sshll.u32 %s1015_s3, 4  ;;  %s58_s8 = int_to_ptr.hbm [resolvable:$true] %s57_s8 }
   0x5   :  { %s35_s28 = sshll.u32 %s931_s27, 4  ;;  %s932_s9 = smov [#allocation8]   ;;  %s36_s28 = int_to_ptr.vmem [resolvable:$true] %s35_s28 }
   0x6   :  { %38 = dma.hbm_to_vmem [thread:$0]  %s34_s26, 128, %s36_s28, [#allocation6]  }
   0x7   :  { %s59_s10 = sshll.u32 %s932_s9, 4  ;;  %s81_s13 = sshll.u32 %s1017_s5, 4  ;;  %s60_s10 = int_to_ptr.vmem [resolvable:$true] %s59_s10  ;;  %s82_s13 = int_to_ptr.hbm [resolvable:$true] %s81_s13 }
   0x8   :  { %62 = dma.hbm_to_vmem [thread:$0]  %s58_s8, 128, %s60_s10, [#allocation9]  }
   0x9   :  { %s22_s15 = sshll.u32 %s1012_s0, 4  ;;  %s933_s16 = smov [#allocation11]   ;;  %s23_s15 = int_to_ptr.hbm [resolvable:$true] %s22_s15 }
   0xa   :  { %s83_s17 = sshll.u32 %s933_s16, 4  ;;  %s934_s3 = smov [#allocation2]   ;;  %s84_s17 = int_to_ptr.vmem [resolvable:$true] %s83_s17 }
   0xb   :  { %86 = dma.hbm_to_vmem [thread:$0]  %s82_s13, 128, %s84_s17, [#allocation12]  }
   0xc   :  { %s24_s18 = sshll.u32 %s934_s3, 4  ;;  %s43_s21 = sshll.u32 %s1014_s2, 4  ;;  %s25_s18 = int_to_ptr.vmem [resolvable:$true] %s24_s18  ;;  %s44_s21 = int_to_ptr.hbm [resolvable:$true] %s43_s21 }
   0xd   :  { %27 = dma.hbm_to_vmem [thread:$0]  %s23_s15, 128, %s25_s18, [#allocation3]  }
   0xe   :  { %s935_s5 = smov [#allocation7]   ;;  %s67_s0 = sshll.u32 %s1016_s4, 4  ;;  %s68_s0 = int_to_ptr.hbm [resolvable:$true] %s67_s0 }
   0xf   :  { %s45_s22 = sshll.u32 %s935_s5, 4  ;;  %s936_s25 = smov 128   ;;  %s46_s22 = int_to_ptr.vmem [resolvable:$true] %s45_s22 }
  0x10   :  { %s937_s26 = smov 8   ;;  %s938_s27 = smov [#allocation10]  }
  0x11   :  { %51 = dma.hbm_to_vmem [thread:$0]  %s44_s21, 256, %s46_s22, [#allocation6], %s936_s25, %s936_s25, %s937_s26  }
  0x12   :  { %s69_s28 = sshll.u32 %s938_s27, 4  ;;  %s92_s2 = sshll.u32 %s1018_s6, 4  ;;  %s70_s28 = int_to_ptr.vmem [resolvable:$true] %s69_s28  ;;  %s93_s2 = int_to_ptr.hbm [resolvable:$true] %s92_s2 }
  0x13   :  { %75 = dma.hbm_to_vmem [thread:$0]  %s68_s0, 4096, %s70_s28, [#allocation9], %s936_s25, %s936_s25, %s937_s26  }
  0x14   :  { %s939_s8 = smov [#allocation13]  }
  0x15   :  { %s94_s9 = sshll.u32 %s939_s8, 4  ;;  %s95_s9 = int_to_ptr.vmem [resolvable:$true] %s94_s9 }
  0x16   :  { %97 = dma.hbm_to_vmem [thread:$0]  %s93_s2, 128, %s95_s9, [#allocation12]  }
  0x17   :  { %921 = dma.done.wait [#allocation3], 128  }
  0x18   :  { %922 = vsyncadd [#allocation3], 4294967168 }
  0x19   :  { %923 = dma.done.wait [#allocation6], 384  }
  0x1a   :  { %924 = vsyncadd [#allocation6], 4294966912 }
  0x1b   :  { %925 = dma.done.wait [#allocation9], 4224  }
  0x1c   :  { %926 = vsyncadd [#allocation9], 4294963072 }
  0x1d   :  { %927 = dma.done.wait [#allocation12], 256  }
  0x1e   :  { %928 = vsyncadd [#allocation12], 4294967040  ;;  %v547_v0 = vld [vmem:[#allocation7] sm:$0xf]  ;;  %v684_v1 = vld [vmem:[#allocation7 + $0x4] sm:$0xf0] }
  0x1f   :  { %v683_v2 = vld [vmem:[#allocation7 + $0x4] sm:$0xf]  ;;  %v548_v3 = vor.u32 %v684_v1, %v547_v0  ;;  %v549_v4 = vld [vmem:[#allocation7 + $0x8] sm:$0xf0]  ;;  %v133_v5 = vld [vmem:[#allocation8] sm:$0xff]  ;;  %vm143_vm0 = vcmask 1043456  }
  0x20   :  { %v127_v6 = vld [vmem:[#allocation2] sm:$0xff]  ;;  %vm186_vm1 = vcmask 130048   ;;  %v552_v7 = vor.u32 %v683_v2, %v549_v4  ;;  %v135_v8 = vunpack.c.l.b16 %v133_v5  ;;  %v136_v9 = vunpack.c.h.b16 %v133_v5  ;;  %v129_v11 = vld [vmem:[#allocation5] sm:$0xff]  ;;  %v613_v12 = vld [vmem:[#allocation10 + $0x70] sm:$0xf]  ;;  %s940_s6 = smov [#allocation14]  }
  0x21   :  { %v128_v10 = vpack.c.bf16 %v127_v6, %v127_v6  ;;  %v700_v13 = vld [vmem:[#allocation10 + $0x74] sm:$0xf0]  ;;  %197 = vmatpush.bf16.msra.mxu2 %v548_v3  ;;  %v677_v14 = vld [vmem:[#allocation10 + $0xf0] sm:$0xf]  ;;  %v699_v16 = vld [vmem:[#allocation10 + $0x74] sm:$0xf]  ;;  %v130_v30 = vpack.c.bf16 %v129_v11, %v129_v11 }
  0x22   :  { %v716_v15 = vld [vmem:[#allocation10 + $0xf4] sm:$0xf0]  ;;  %210 = vmatpush.bf16.msra.mxu3 %v552_v7  ;;  %v137_v17 = vpack.c.b16 %v135_v8, %v135_v8  ;;  %v138_v18 = vpack.c.b16 %v136_v9, %v136_v9  ;;  %v614_v19 = vor.u32 %v700_v13, %v613_v12  ;;  %v615_v20 = vld [vmem:[#allocation10 + $0x78] sm:$0xf0]  ;;  %v715_v21 = vld [vmem:[#allocation10 + $0xf4] sm:$0xf] }
  0x23   :  { %v679_v22 = vld [vmem:[#allocation10 + $0xf8] sm:$0xf0]  ;;  %v678_v23 = vor.u32 %v716_v15, %v677_v14  ;;  %v618_v24 = vor.u32 %v699_v16, %v615_v20  ;;  %v605_v25 = vld [vmem:[#allocation10 + $0x60] sm:$0xf]  ;;  %v698_v26 = vld [vmem:[#allocation10 + $0x64] sm:$0xf0] }
  0x24   :  { %v669_v27 = vld [vmem:[#allocation10 + $0xe0] sm:$0xf]  ;;  %v145_v28 = vsel %vm143_vm0, %v137_v17, 0  ;;  %v148_v29 = vsel %vm143_vm0, %v138_v18, 0  ;;  %553 = vmatmul.msk.bf16.vlgmr.msra.gmra.mxu2 %vm186_vm1, %v128_v10  ;;  %v714_v31 = vld [vmem:[#allocation10 + $0xe4] sm:$0xf0]  ;;  %v682_v33 = vor.u32 %v715_v21, %v679_v22  ;;  %v606_v35 = vor.u32 %v698_v26, %v605_v25 }
  0x25   :  { %v697_v32 = vld [vmem:[#allocation10 + $0x64] sm:$0xf]  ;;  %157 = vmatpush.bf16.msra.mxu0 %v145_v28  ;;  %170 = vmatpush.bf16.msra.mxu1 %v148_v29  ;;  %vm139_vm2 = vcmask 64512   ;;  %v607_v34 = vld [vmem:[#allocation10 + $0x68] sm:$0xf0]  ;;  %v670_v38 = vor.u32 %v714_v31, %v669_v27  ;;  %s528_s10 = sshll.u32 %s940_s6, 4  ;;  %s529_s10 = int_to_ptr.vmem [resolvable:$true] %s528_s10 }
  0x26   :  { %554 = vmatmul.msk.bf16.vlgmr.msra.gmra.mxu3 %vm186_vm1, %v128_v10  ;;  %v713_v36 = vld [vmem:[#allocation10 + $0xe4] sm:$0xf]  ;;  %v671_v37 = vld [vmem:[#allocation10 + $0xe8] sm:$0xf0]  ;;  %453 = vmatpush.bf16.msrb.mxu2 %v618_v24  ;;  %v610_v39 = vor.u32 %v697_v32, %v607_v34  ;;  %v597_v40 = vld [vmem:[#allocation10 + $0x50] sm:$0xf] }
  0x27   :  { %v696_v41 = vld [vmem:[#allocation10 + $0x54] sm:$0xf0]  ;;  %v661_v42 = vld [vmem:[#allocation10 + $0xd0] sm:$0xf]  ;;  %v695_v44 = vld [vmem:[#allocation10 + $0x54] sm:$0xf]  ;;  %466 = vmatpush.bf16.msrb.mxu3 %v682_v33  ;;  %v674_v46 = vor.u32 %v713_v36, %v671_v37 }
  0x28   :  { %543 = vmatmul.msk.bf16.vlgmr.msra.gmra.mxu0 %vm139_vm2, %v130_v30  ;;  %544 = vmatmul.msk.bf16.vlgmr.msra.gmra.mxu1 %vm139_vm2, %v130_v30  ;;  %v712_v43 = vld [vmem:[#allocation10 + $0xd4] sm:$0xf0]  ;;  %v599_v45 = vld [vmem:[#allocation10 + $0x58] sm:$0xf0]  ;;  %v598_v47 = vor.u32 %v696_v41, %v597_v40  ;;  %v711_v48 = vld [vmem:[#allocation10 + $0xd4] sm:$0xf] }
  0x29   :  { %427 = vmatpush.bf16.msrb.mxu0 %v614_v19  ;;  %440 = vmatpush.bf16.msrb.mxu1 %v678_v23  ;;  %v663_v49 = vld [vmem:[#allocation10 + $0xd8] sm:$0xf0]  ;;  %v662_v50 = vor.u32 %v712_v43, %v661_v42  ;;  %v602_v51 = vor.u32 %v695_v44, %v599_v45  ;;  %v589_v52 = vld [vmem:[#allocation10 + $0x40] sm:$0xf]  ;;  %v694_v53 = vld [vmem:[#allocation10 + $0x44] sm:$0xf0] }
  0x2a   :  { %454 = vmatpush.bf16.msrb.mxu2 %v610_v39  ;;  %v653_v54 = vld [vmem:[#allocation10 + $0xc0] sm:$0xf]  ;;  %v710_v55 = vld [vmem:[#allocation10 + $0xc4] sm:$0xf0]  ;;  %v693_v56 = vld [vmem:[#allocation10 + $0x44] sm:$0xf]  ;;  %v666_v58 = vor.u32 %v711_v48, %v663_v49  ;;  %v590_v59 = vor.u32 %v694_v53, %v589_v52 }
  0x2b   :  { %v591_v57 = vld [vmem:[#allocation10 + $0x48] sm:$0xf0]  ;;  %467 = vmatpush.bf16.msrb.mxu3 %v674_v46  ;;  %v709_v60 = vld [vmem:[#allocation10 + $0xc4] sm:$0xf]  ;;  %v654_v62 = vor.u32 %v710_v55, %v653_v54  ;;  %v581_v0 = vld [vmem:[#allocation10 + $0x30] sm:$0xf] }
  0x2c   :  { %v655_v61 = vld [vmem:[#allocation10 + $0xc8] sm:$0xf0]  ;;  %v594_v63 = vor.u32 %v693_v56, %v591_v57  ;;  %v692_v1 = vld [vmem:[#allocation10 + $0x34] sm:$0xf0]  ;;  %v645_v2 = vld [vmem:[#allocation10 + $0xb0] sm:$0xf] }
  0x2d   :  { %428 = vmatpush.bf16.msrb.mxu0 %v606_v35  ;;  %441 = vmatpush.bf16.msrb.mxu1 %v670_v38  ;;  %v708_v3 = vld [vmem:[#allocation10 + $0xb4] sm:$0xf0]  ;;  %v691_v4 = vld [vmem:[#allocation10 + $0x34] sm:$0xf]  ;;  %v583_v5 = vld [vmem:[#allocation10 + $0x38] sm:$0xf0]  ;;  %v658_v6 = vor.u32 %v709_v60, %v655_v61  ;;  %v582_v7 = vor.u32 %v692_v1, %v581_v0 }
  0x2e   :  { %455 = vmatpush.bf16.msrb.mxu2 %v602_v51  ;;  %v707_v8 = vld [vmem:[#allocation10 + $0xb4] sm:$0xf]  ;;  %v647_v9 = vld [vmem:[#allocation10 + $0xb8] sm:$0xf0]  ;;  %v646_v10 = vor.u32 %v708_v3, %v645_v2  ;;  %v586_v11 = vor.u32 %v691_v4, %v583_v5  ;;  %v573_v13 = vld [vmem:[#allocation10 + $0x20] sm:$0xf] }
  0x2f   :  { %468 = vmatpush.bf16.msrb.mxu3 %v666_v58  ;;  %v650_v12 = vor.u32 %v707_v8, %v647_v9  ;;  %v690_v14 = vld [vmem:[#allocation10 + $0x24] sm:$0xf0]  ;;  %v637_v15 = vld [vmem:[#allocation10 + $0xa0] sm:$0xf]  ;;  %v689_v18 = vld [vmem:[#allocation10 + $0x24] sm:$0xf] }
  0x30   :  { %v574_v16 = vor.u32 %v690_v14, %v573_v13  ;;  %v706_v17 = vld [vmem:[#allocation10 + $0xa4] sm:$0xf0]  ;;  %v575_v19 = vld [vmem:[#allocation10 + $0x28] sm:$0xf0]  ;;  %v705_v22 = vld [vmem:[#allocation10 + $0xa4] sm:$0xf] }
  0x31   :  { %429 = vmatpush.bf16.msrb.mxu0 %v598_v47  ;;  %442 = vmatpush.bf16.msrb.mxu1 %v662_v50  ;;  %v638_v20 = vor.u32 %v706_v17, %v637_v15  ;;  %v578_v21 = vor.u32 %v689_v18, %v575_v19  ;;  %v639_v23 = vld [vmem:[#allocation10 + $0xa8] sm:$0xf0]  ;;  %v565_v25 = vld [vmem:[#allocation10 + $0x10] sm:$0xf]  ;;  %v688_v26 = vld [vmem:[#allocation10 + $0x14] sm:$0xf0] }
  0x32   :  { %456 = vmatpush.bf16.msrb.mxu2 %v594_v63  ;;  %v642_v24 = vor.u32 %v705_v22, %v639_v23  ;;  %v629_v27 = vld [vmem:[#allocation10 + $0x90] sm:$0xf]  ;;  %v566_v28 = vor.u32 %v688_v26, %v565_v25  ;;  %v704_v29 = vld [vmem:[#allocation10 + $0x94] sm:$0xf0]  ;;  %v687_v30 = vld [vmem:[#allocation10 + $0x14] sm:$0xf] }
  0x33   :  { %469 = vmatpush.bf16.msrb.mxu3 %v658_v6  ;;  %v630_v31 = vor.u32 %v704_v29, %v629_v27  ;;  %v567_v32 = vld [vmem:[#allocation10 + $0x18] sm:$0xf0]  ;;  %v703_v33 = vld [vmem:[#allocation10 + $0x94] sm:$0xf]  ;;  %v557_v37 = vld [vmem:[#allocation10] sm:$0xf] }
  0x34   :  { %v631_v34 = vld [vmem:[#allocation10 + $0x98] sm:$0xf0]  ;;  %v570_v35 = vor.u32 %v687_v30, %v567_v32  ;;  %v686_v38 = vld [vmem:[#allocation10 + $0x4] sm:$0xf0]  ;;  %v621_v39 = vld [vmem:[#allocation10 + $0x80] sm:$0xf] }
  0x35   :  { %430 = vmatpush.bf16.msrb.mxu0 %v590_v59  ;;  %443 = vmatpush.bf16.msrb.mxu1 %v654_v62  ;;  %v634_v36 = vor.u32 %v703_v33, %v631_v34  ;;  %v558_v40 = vor.u32 %v686_v38, %v557_v37  ;;  %v702_v41 = vld [vmem:[#allocation10 + $0x84] sm:$0xf0]  ;;  %v685_v42 = vld [vmem:[#allocation10 + $0x4] sm:$0xf]  ;;  %v559_v43 = vld [vmem:[#allocation10 + $0x8] sm:$0xf0] }
  0x36   :  { %457 = vmatpush.bf16.msrb.mxu2 %v586_v11  ;;  %v622_v44 = vor.u32 %v702_v41, %v621_v39  ;;  %v562_v45 = vor.u32 %v685_v42, %v559_v43  ;;  %v701_v46 = vld [vmem:[#allocation10 + $0x84] sm:$0xf]  ;;  %v623_v47 = vld [vmem:[#allocation10 + $0x88] sm:$0xf0]  ;;  %v484_v4 = vld [vmem:[#allocation13 + $0x2] sm:$0x1] }
  0x37   :  { %470 = vmatpush.bf16.msrb.mxu3 %v650_v12  ;;  %v626_v48 = vor.u32 %v701_v46, %v623_v47  ;;  %v216_v49 = vld [vmem:[#allocation13] ss:$4 sm:$0x3]  ;;  %717 = vpush %v484_v4  ;;  %v218_v5 = vld [vmem:[#allocation13 + $0x1] ss:$4 sm:$0x3] }
  0x38   :  { %v220_v52 = vperm.slane %v216_v49, 0  ;;  %v221_v55 = vperm.slane %v216_v49, 1  ;;  %v263_v6 = vperm.slane %v218_v5, 0  ;;  %v264_v11 = vperm.slane %v218_v5, 1  ;;  %v483_v13 = vld [vmem:[#allocation11] sm:$0xff]  ;;  %s530_s13 = sshll.u32 %s1019_s7, 4  ;;  %s531_s13 = int_to_ptr.hbm [resolvable:$true] %s530_s13 }
  0x39   :  { %431 = vmatpush.bf16.msrb.mxu0 %v582_v7  ;;  %444 = vmatpush.bf16.msrb.mxu1 %v646_v10  ;;  %v490_v19 = vunpack.c.l.b16 %v483_v13  ;;  %v491_v26 = vunpack.c.h.b16 %v483_v13 }
  0x3a   :  { %458 = vmatpush.bf16.msrb.mxu2 %v578_v21 }
  0x3b   :  { %471 = vmatpush.bf16.msrb.mxu3 %v642_v24  ;;  %v492_v23 = vpack.c.b16 %v490_v19, %v490_v19 }
  0x3d   :  { %432 = vmatpush.bf16.msrb.mxu0 %v574_v16  ;;  %445 = vmatpush.bf16.msrb.mxu1 %v638_v20 }
  0x3e   :  { %459 = vmatpush.bf16.msrb.mxu2 %v570_v35 }
  0x3f   :  { %472 = vmatpush.bf16.msrb.mxu3 %v634_v36 }
  0x41   :  { %433 = vmatpush.bf16.msrb.mxu0 %v566_v28  ;;  %446 = vmatpush.bf16.msrb.mxu1 %v630_v31  ;;  %v493_v28 = vpack.c.b16 %v491_v26, %v491_v26 }
  0x42   :  { %460 = vmatpush.bf16.msrb.mxu2 %v562_v45 }
  0x43   :  { %473 = vmatpush.bf16.msrb.mxu3 %v626_v48 }
  0x45   :  { %434 = vmatpush.bf16.msrb.mxu0 %v558_v40  ;;  %447 = vmatpush.bf16.msrb.mxu1 %v622_v44 }
  0x68   :  { %s718_s4 = spop %717 }
  0x69   :  { %v487_v30 = vstv %s718_s4 }
  0xa5   :  { %v159_v50 = vpop.f32.mrf.mxu0  ;;  %v172_v51 = vpop.f32.mrf.mxu1 }
  0xa7   :  { %v199_v53 = vpop.f32.mrf.mxu2 }
  0xa8   :  { %v200_v54 = vadd.f32 %v199_v53, %v159_v50 }
  0xa9   :  { %v212_v56 = vpop.f32.mrf.mxu3 }
  0xaa   :  { %v224_v57 = vadd.f32 %v220_v52, %v200_v54  ;;  %v213_v58 = vadd.f32 %v212_v56, %v172_v51 }
  0xac   :  { %v226_v59 = vmax.f32 %v224_v57, 0.0  ;;  %v225_v60 = vadd.f32 %v221_v55, %v213_v58 }
  0xad   :  { %v161_v61 = vpop.f32.mrf.mxu0  ;;  %v174_v62 = vpop.f32.mrf.mxu1 }
  0xae   :  { %v228_v63 = vpack.c.bf16 %v226_v59, %v226_v59  ;;  %v227_v0 = vmax.f32 %v225_v60, 0.0 }
  0xaf   :  { %v201_v1 = vpop.f32.mrf.mxu2 }
  0xb0   :  { %v229_v2 = vpack.c.bf16 %v227_v0, %v227_v0  ;;  %435 = vmatmul.bf16.vlgmr.msrb.gmra.mxu0 %v228_v63  ;;  %461 = vmatmul.bf16.vlgmr.msrb.gmra.mxu2 %v228_v63 }
  0xb1   :  { %v214_v3 = vpop.f32.mrf.mxu3 }
  0xb2   :  { %448 = vmatmul.bf16.vlgmr.msrb.gmra.mxu1 %v229_v2  ;;  %474 = vmatmul.bf16.vlgmr.msrb.gmra.mxu3 %v229_v2 }
 0x12d   :  { %v436_v7 = vpop.f32.mrf.mxu0 }
 0x12e   :  { %v437_v8 = vadd.f32 %v436_v7, %v263_v6 }
 0x12f   :  { %v449_v9 = vpop.f32.mrf.mxu1 }
 0x130   :  { %v450_v10 = vadd.f32 %v449_v9, %v437_v8 }
 0x132   :  { %v479_v12 = vmax.f32 %v450_v10, 0.0 }
 0x133   :  { %v462_v14 = vpop.f32.mrf.mxu2 }
 0x134   :  { %v481_v15 = vpack.c.bf16 %v479_v12, %v479_v12  ;;  %v463_v16 = vadd.f32 %v462_v14, %v264_v11 }
 0x135   :  { %v475_v17 = vpop.f32.mrf.mxu3  ;;  %v438_v18 = vpop.f32.mrf.mxu0 }
 0x136   :  { %v476_v20 = vadd.f32 %v475_v17, %v463_v16  ;;  %503 = vmatpush.bf16.xpose.msra.mxu0 %v481_v15 }
 0x137   :  { %v451_v21 = vpop.f32.mrf.mxu1 }
 0x138   :  { %v480_v22 = vmax.f32 %v476_v20, 0.0 }
 0x13a   :  { %v482_v24 = vpack.c.bf16 %v480_v22, %v480_v22 }
 0x13b   :  { %v464_v25 = vpop.f32.mrf.mxu2 }
 0x13c   :  { %516 = vmatpush.bf16.xpose.msra.mxu1 %v482_v24 }
 0x13d   :  { %v477_v27 = vpop.f32.mrf.mxu3  ;;  %504 = vmatmul.bf16.vlgmr.msra.gmra.mxu0 %v492_v23 }
 0x143   :  { %517 = vmatmul.bf16.vlgmr.msra.gmra.mxu1 %v493_v28 }
 0x1ba   :  { %v505_v29 = vpop.f32.mrf.mxu0 }
 0x1bb   :  { %v506_v31 = vadd.f32 %v505_v29, %v487_v30 }
 0x1c0   :  { %v518_v32 = vpop.f32.mrf.mxu1 }
 0x1c1   :  { %v519_v33 = vadd.f32 %v518_v32, %v506_v31 }
 0x1c2   :  { %v507_v34 = vpop.f32.mrf.mxu0 }
 0x1c3   :  { %522 = vst.msk [vmem:[#allocation14] sm:$0xff] %vm139_vm2, %v519_v33 }
 0x1c4   :  { %533 = dma.vmem_to_hbm [thread:$0]  %s529_s10, 128, %s531_s13, [#allocation4]  }
 0x1c8   :  { %v520_v35 = vpop.f32.mrf.mxu1 }
 0x1c9   :  { %929 = dma.done.wait [#allocation4], 128  }
 0x1ca   :  { %930 = vsyncadd [#allocation4], 4294967168 }
 0x1cb   :  { %538 = vsyncpa [#allocation3], 1 }
 0x1cc   :  { %539 = vsyncpa [#allocation6], 1 }
 0x1cd   :  { %540 = vsyncpa [#allocation9], 1 }
 0x1ce   :  { %541 = vsyncpa [#allocation12], 1 }
 0x1cf   :  { %542 = vsyncpa [#allocation4], 1 }

</bundles_post_ra>
